<compile_context>
chip_gen: v6e
topology: v6e:2x2x1
jax: 0.10.0
libtpu: 0.0.40
codegen_flags: <defaults>
</compile_context>

<pallas_src>
import functools
import math

import jax
import jax.numpy as jnp
import numpy as np
from jax import lax
from jax.experimental import pallas as pl
from jax.experimental.pallas import tpu as pltpu

EPS = 1e-5


def _bn_folded(y, w_groups, c, inv_count):
    """Training-mode BatchNorm2d (weight=1, bias=0) on a lane-folded (N*H, W*C) f32 slab.

    Lane index = w*C + c.  One fused pass of sum / sum-of-squares; the W lane groups are
    folded with a log2(W) XLU roll-and-add tree which simultaneously broadcasts the per-C
    statistics back across every group -- no lane slicing, no concatenation.
    """
    s = jnp.sum(y, axis=0, keepdims=True)            # (1, W*C)
    ss = jnp.sum(y * y, axis=0, keepdims=True)       # (1, W*C)
    if w_groups & (w_groups - 1) == 0:
        k = w_groups
        while k > 1:
            k //= 2
            s = s + pltpu.roll(s, k * c, axis=1)
            ss = ss + pltpu.roll(ss, k * c, axis=1)
        mean = s * inv_count
        var = ss * inv_count - mean * mean           # one-pass (biased) variance
    else:
        # Fallback for non power-of-two W: slice-fold + concat broadcast.
        s_c = sum(s[:, i * c:(i + 1) * c] for i in range(w_groups))
        ss_c = sum(ss[:, i * c:(i + 1) * c] for i in range(w_groups))
        mean_c = s_c * inv_count
        var_c = ss_c * inv_count - mean_c * mean_c
        mean = jnp.concatenate([mean_c] * w_groups, axis=1)
        var = jnp.concatenate([var_c] * w_groups, axis=1)
    return (y - mean) * lax.rsqrt(var + EPS)


def _simple_block_kernel(x_ref, b1d_ref, b1m_ref, b1u_ref,
                         b2d_ref, b2m_ref, b2u_ref, out_ref,
                         *, H, W, Cout, shortcut_1x1):
    NH = x_ref.shape[0]
    WCout = W * Cout
    inv_count = 1.0 / float((NH // H) * H * W)       # N*H*W samples per BN channel
    f32 = jnp.float32

    x = x_ref[...]                                   # (N*H, W*Cin), bf16
    x_f = x.astype(f32)

    # Row index inside each image -> masks realising the H halo of the 3x3 convs.
    row = lax.broadcasted_iota(jnp.int32, (NH, 1), 0) % H
    first_row = row == 0
    last_row = row == H - 1

    def shifted(v):
        """(row h-1, row h+1) copies of a f32 slab, zero-filled at image boundaries.

        XLU sublane rotation (pltpu.roll) + masks: no slab concat copies on the VPU/store
        slots.  Rolls stay 32-bit; callers cast back to bf16 for the MXU (exact round-trip).
        """
        z = jnp.zeros_like(v)
        dn = jnp.where(first_row, z, pltpu.roll(v, 1, axis=0))        # value at row h-1
        up = jnp.where(last_row, z, pltpu.roll(v, NH - 1, axis=0))    # value at row h+1
        return dn, up

    # ---- conv1: 3x3/s1/p1 as 3 accumulating bf16 MXU matmuls (one per kh row-block).
    #      The 1x1 shortcut is fused into the kh=1 block -> [y1_center | sc] in one pass. ----
    x_dn_f, x_up_f = shifted(x_f)
    x_dn = x_dn_f.astype(x.dtype)
    x_up = x_up_f.astype(x.dtype)
    r_mid = jnp.dot(x, b1m_ref[...], preferred_element_type=f32)      # (NH, WCout or 2*WCout)
    y1 = jnp.dot(x_dn, b1d_ref[...], preferred_element_type=f32)
    y1 = y1 + jnp.dot(x_up, b1u_ref[...], preferred_element_type=f32)
    y1 = y1 + (r_mid[:, :WCout] if shortcut_1x1 else r_mid)
    y1 = jnp.maximum(_bn_folded(y1, W, Cout, inv_count), 0.0)         # BN1 + ReLU1 (f32)

    # ---- conv2: 3x3/s1/p1, bf16 operands on the MXU, f32 accumulation ----
    y1_dn_f, y1_up_f = shifted(y1)
    y1_b = y1.astype(x.dtype)
    y1d_b = y1_dn_f.astype(x.dtype)
    y1u_b = y1_up_f.astype(x.dtype)
    y2 = jnp.dot(y1d_b, b2d_ref[...], preferred_element_type=f32)
    y2 = y2 + jnp.dot(y1_b, b2m_ref[...], preferred_element_type=f32)
    y2 = y2 + jnp.dot(y1u_b, b2u_ref[...], preferred_element_type=f32)
    y2 = _bn_folded(y2, W, Cout, inv_count)                           # BN2

    # ---- shortcut ----
    if shortcut_1x1:
        sc = _bn_folded(r_mid[:, WCout:], W, Cout, inv_count)         # BNshortcut
    else:
        sc = x_f                                                      # identity

    out_ref[...] = jnp.maximum(y2 + sc, 0.0).astype(out_ref.dtype)    # ReLU2, lane-dense bf16


def _banded_conv3x3_blocks(w_hwio, width):
    """Fold the kw taps + Cin of a 3x3 HWIO kernel into three block-banded kh row-blocks.

    Returns (B0, B1, B2), each (width*Cin, width*Cout), such that with the activation folded
    as X[(n,h), w*Cin + ci], the zero-padded stride-1 conv is
        y[(n,h)] = X(h-1) @ B0 + X(h) @ B1 + X(h+1) @ B2
    (the W-direction zero padding is baked in as structural zeros of each band).
    """
    kh, kw, cin, cout = w_hwio.shape
    # S[dw, p, w] = 1  iff  p == w + dw - 1   (shifted, boundary-clipped identities)
    s = jnp.stack([jnp.eye(width, width, k=1 - dw, dtype=jnp.float32) for dw in range(kw)])
    b = jnp.einsum("dpw,hdio->hpiwo", s, w_hwio.astype(jnp.float32))
    b = b.reshape(kh, width * cin, width * cout)
    return b[0], b[1], b[2]


def _banded_conv1x1(w_io, width):
    """1x1 conv (Cin, Cout) -> block-diagonal (width*Cin, width*Cout) matrix."""
    cin, cout = w_io.shape
    b = jnp.einsum("pw,io->piwo", jnp.eye(width, dtype=jnp.float32),
                   w_io.astype(jnp.float32))
    return b.reshape(width * cin, width * cout)


def simple_block(x_nhwc, w1, w2, wsc=None, *, half_res=False, act_dtype=jnp.bfloat16):
    """SimpleBlock forward (stride-1 path).

    x_nhwc: (N, H, W, Cin);  w1: (3, 3, Cin, Cout) HWIO;  w2: (3, 3, Cout, Cout);
    wsc: (Cin, Cout) when Cin != Cout (1x1-conv + BN shortcut), else None (identity).
    """
    assert not half_res, "TODO(synk): stride-2 (half_res) path not implemented"
    N, H, W, Cin = x_nhwc.shape
    Cout = w1.shape[-1]
    shortcut_1x1 = Cin != Cout
    if shortcut_1x1 and wsc is None:
        raise ValueError("Cin != Cout requires a 1x1 shortcut weight")

    # Lane-dense presentation: fold W and C onto the lane axis (free, contiguous reshape).
    x2d = x_nhwc.reshape(N * H, W * Cin).astype(act_dtype)

    # Weight pre-packing (tiny, parameter-side work).
    b1d, b1m, b1u = _banded_conv3x3_blocks(w1, W)         # each (W*Cin,  W*Cout)
    b2d, b2m, b2u = _banded_conv3x3_blocks(w2, W)         # each (W*Cout, W*Cout)
    if shortcut_1x1:
        # Fuse the 1x1 shortcut into conv1's center row-block: one 2*W*Cout-wide matmul.
        b1m = jnp.concatenate([b1m, _banded_conv1x1(wsc, W)], axis=1)

    args = [x2d,
            b1d.astype(act_dtype), b1m.astype(act_dtype), b1u.astype(act_dtype),
            b2d.astype(act_dtype), b2m.astype(act_dtype), b2u.astype(act_dtype)]

    # True conv FLOPs / bytes (the banded matmuls inflate the implicit MXU-work estimate).
    flops = 2 * N * H * W * 9 * (Cin * Cout + Cout * Cout)
    if shortcut_1x1:
        flops += 2 * N * H * W * Cin * Cout
    transcendentals = Cout * (3 if shortcut_1x1 else 2)   # rsqrt per BN channel
    out_bytes = N * H * W * Cout * jnp.dtype(act_dtype).itemsize
    bytes_accessed = int(sum(int(a.size) * a.dtype.itemsize for a in args)) + out_bytes

    kernel = functools.partial(_simple_block_kernel, H=H, W=W, Cout=Cout,
                               shortcut_1x1=shortcut_1x1)
    vmem = pl.BlockSpec(memory_space=pltpu.MemorySpace.VMEM)
    out2d = pl.pallas_call(
        kernel,
        out_shape=jax.ShapeDtypeStruct((N * H, W * Cout), act_dtype),
        in_specs=[vmem] * len(args),
        out_specs=vmem,
        cost_estimate=pl.CostEstimate(flops=flops, transcendentals=transcendentals,
                                      bytes_accessed=bytes_accessed),
    )(*args)
    return out2d.reshape(N, H, W, Cout)


def simple_block_reference(x_nhwc, w1, w2, wsc=None):
    """Pure-JAX mirror of PyTorch SimpleBlock.forward (training-mode BatchNorm)."""
    hi = lax.Precision.HIGHEST

    def conv(x, w, pad):
        return lax.conv_general_dilated(
            x, w, window_strides=(1, 1), padding=pad,
            dimension_numbers=("NHWC", "HWIO", "NHWC"), precision=hi)

    def bn(y):
        mean = jnp.mean(y, axis=(0, 1, 2), keepdims=True)
        var = jnp.mean((y - mean) ** 2, axis=(0, 1, 2), keepdims=True)
        return (y - mean) * lax.rsqrt(var + EPS)

    y = jnp.maximum(bn(conv(x_nhwc, w1, ((1, 1), (1, 1)))), 0.0)
    y = bn(conv(y, w2, ((1, 1), (1, 1))))
    if wsc is None:
        sc = x_nhwc
    else:
        sc = bn(conv(x_nhwc, wsc.reshape(1, 1, *wsc.shape), ((0, 0), (0, 0))))
    return jnp.maximum(y + sc, 0.0)


if __name__ == "__main__":
    N, H, W = 2, 16, 16
    key = jax.random.PRNGKey(0)

    def make_case(k, indim, outdim):
        kx, k1, k2, ks = jax.random.split(k, 4)
        std3 = math.sqrt(2.0 / (3 * 3 * outdim))        # init_layer Kaiming-He normal
        std1 = math.sqrt(2.0 / (1 * 1 * outdim))
        bf16 = jnp.bfloat16
        # bf16 inputs/weights are the kernel's HBM dtype; the f32 reference consumes the
        # same bf16-rounded values, so kernel vs. reference is apples-to-apples.
        x = jax.random.normal(kx, (N, H, W, indim), jnp.float32).astype(bf16)
        w1 = (std3 * jax.random.normal(k1, (3, 3, indim, outdim), jnp.float32)).astype(bf16)
        w2 = (std3 * jax.random.normal(k2, (3, 3, outdim, outdim), jnp.float32)).astype(bf16)
        wsc = None
        if indim != outdim:
            wsc = (std1 * jax.random.normal(ks, (indim, outdim), jnp.float32)).astype(bf16)
        return x, w1, w2, wsc

    def check(x, w1, w2, wsc):
        out = jax.block_until_ready(simple_block(x, w1, w2, wsc, half_res=False))
        f32 = jnp.float32
        ref = jax.block_until_ready(simple_block_reference(
            x.astype(f32), w1.astype(f32), w2.astype(f32),
            None if wsc is None else wsc.astype(f32)))
        # conv1 / shortcut products are exact (bf16 operands both sides, f32 acc); conv2 uses
        # bf16-rounded y1 and the output is stored in bf16, so tolerance covers ~1e-2 drift.
        np.testing.assert_allclose(np.asarray(out.astype(f32)), np.asarray(ref),
                                   rtol=2e-2, atol=2e-2)

    ka, kb = jax.random.split(key)
    check(*make_case(ka, 4, 8))    # indim != outdim -> 1x1-conv + BN shortcut (fused)
    check(*make_case(kb, 8, 8))    # indim == outdim -> identity shortcut

    print("KERNEL_OK")
</pallas_src>

<mosaic_0001>
module attributes {stable_mosaic.version = 11 : i64} {
  func.func @_simple_block_kernel(%arg0: memref<32x64xbf16, #tpu.memory_space<vmem>>, %arg1: memref<64x128xbf16, #tpu.memory_space<vmem>>, %arg2: memref<64x256xbf16, #tpu.memory_space<vmem>>, %arg3: memref<64x128xbf16, #tpu.memory_space<vmem>>, %arg4: memref<128x128xbf16, #tpu.memory_space<vmem>>, %arg5: memref<128x128xbf16, #tpu.memory_space<vmem>>, %arg6: memref<128x128xbf16, #tpu.memory_space<vmem>>, %arg7: memref<32x128xbf16, #tpu.memory_space<vmem>>) attributes {dimension_semantics = [], scalar_prefetch = 0 : i64, scratch_operands = 0 : i64, tpu.core_type = #tpu.core_type<tc>} {
    %c0 = arith.constant 0 : index
    %c0_0 = arith.constant 0 : index
    %0 = vector.load %arg0[%c0, %c0_0] : memref<32x64xbf16, #tpu.memory_space<vmem>>, vector<32x64xbf16>
    %1 = arith.extf %0 : vector<32x64xbf16> to vector<32x64xf32>
    %2 = tpu.iota {dimensions = array<i32: 0>} : vector<32x1xi32>
    %c16_i32 = arith.constant 16 : i32
    %c0_i32 = arith.constant 0 : i32
    %3 = arith.cmpi eq, %c16_i32, %c0_i32 : i32
    %c1_i32 = arith.constant 1 : i32
    %4 = arith.select %3, %c1_i32, %c16_i32 : i32
    %5 = vector.broadcast %4 : i32 to vector<32x1xi32>
    %6 = arith.remsi %2, %5 : vector<32x1xi32>
    %c0_i32_1 = arith.constant 0 : i32
    %7 = vector.broadcast %c0_i32_1 : i32 to vector<32x1xi32>
    %8 = arith.cmpi ne, %6, %7 : vector<32x1xi32>
    %c0_i32_2 = arith.constant 0 : i32
    %9 = vector.broadcast %c0_i32_2 : i32 to vector<32x1xi32>
    %10 = arith.cmpi slt, %6, %9 : vector<32x1xi32>
    %c0_i32_3 = arith.constant 0 : i32
    %11 = arith.cmpi slt, %4, %c0_i32_3 : i32
    %12 = vector.broadcast %11 : i1 to vector<32x1xi1>
    %13 = vector.broadcast %12 : vector<32x1xi1> to vector<32x1xi1>
    %14 = arith.xori %10, %13 : vector<32x1xi1>
    %15 = arith.andi %14, %8 : vector<32x1xi1>
    %16 = vector.broadcast %4 : i32 to vector<32x1xi32>
    %17 = arith.addi %6, %16 : vector<32x1xi32>
    %18 = arith.select %15, %17, %6 : vector<32x1xi1>, vector<32x1xi32>
    %c0_i32_4 = arith.constant 0 : i32
    %19 = vector.broadcast %c0_i32_4 : i32 to vector<32x1xi32>
    %20 = arith.cmpi eq, %18, %19 : vector<32x1xi32>
    %c15_i32 = arith.constant 15 : i32
    %21 = vector.broadcast %c15_i32 : i32 to vector<32x1xi32>
    %22 = arith.cmpi eq, %18, %21 : vector<32x1xi32>
    %cst = arith.constant 0.000000e+00 : f32
    %23 = vector.broadcast %cst : f32 to vector<32x64xf32>
    %c1_i32_5 = arith.constant 1 : i32
    %24 = tpu.dynamic_rotate %1 by %c1_i32_5 dim 0 : vector<32x64xf32>, i32 -> vector<32x64xf32>
    %25 = vector.shape_cast %20 : vector<32x1xi1> to vector<32x1xi1>
    %26 = vector.broadcast %25 : vector<32x1xi1> to vector<32x64xi1>
    %27 = arith.select %26, %23, %24 : vector<32x64xi1>, vector<32x64xf32>
    %c31_i32 = arith.constant 31 : i32
    %28 = tpu.dynamic_rotate %1 by %c31_i32 dim 0 : vector<32x64xf32>, i32 -> vector<32x64xf32>
    %29 = vector.shape_cast %22 : vector<32x1xi1> to vector<32x1xi1>
    %30 = vector.broadcast %29 : vector<32x1xi1> to vector<32x64xi1>
    %31 = arith.select %30, %23, %28 : vector<32x64xi1>, vector<32x64xf32>
    %32 = arith.truncf %27 : vector<32x64xf32> to vector<32x64xbf16>
    %33 = arith.truncf %31 : vector<32x64xf32> to vector<32x64xbf16>
    %c0_6 = arith.constant 0 : index
    %c0_7 = arith.constant 0 : index
    %34 = vector.load %arg2[%c0_6, %c0_7] : memref<64x256xbf16, #tpu.memory_space<vmem>>, vector<64x256xbf16>
    %cst_8 = arith.constant dense<0.000000e+00> : vector<32x256xf32>
    %35 = tpu.matmul %0, %34, %cst_8 {dimension_numbers = #tpu.dot_dimension_numbers<[1], [0], [0], [1], [0, 0, 1, 1], [], []>} : vector<32x64xbf16>, vector<64x256xbf16>, vector<32x256xf32> -> vector<32x256xf32>
    %c0_9 = arith.constant 0 : index
    %c0_10 = arith.constant 0 : index
    %36 = vector.load %arg1[%c0_9, %c0_10] : memref<64x128xbf16, #tpu.memory_space<vmem>>, vector<64x128xbf16>
    %cst_11 = arith.constant dense<0.000000e+00> : vector<32x128xf32>
    %37 = tpu.matmul %32, %36, %cst_11 {dimension_numbers = #tpu.dot_dimension_numbers<[1], [0], [0], [1], [0, 0, 1, 1], [], []>} : vector<32x64xbf16>, vector<64x128xbf16>, vector<32x128xf32> -> vector<32x128xf32>
    %c0_12 = arith.constant 0 : index
    %c0_13 = arith.constant 0 : index
    %38 = vector.load %arg3[%c0_12, %c0_13] : memref<64x128xbf16, #tpu.memory_space<vmem>>, vector<64x128xbf16>
    %cst_14 = arith.constant dense<0.000000e+00> : vector<32x128xf32>
    %39 = tpu.matmul %33, %38, %cst_14 {dimension_numbers = #tpu.dot_dimension_numbers<[1], [0], [0], [1], [0, 0, 1, 1], [], []>} : vector<32x64xbf16>, vector<64x128xbf16>, vector<32x128xf32> -> vector<32x128xf32>
    %40 = arith.addf %37, %39 : vector<32x128xf32>
    %41 = vector.extract_strided_slice %35 {offsets = [0, 0], sizes = [32, 128], strides = [1, 1]} : vector<32x256xf32> to vector<32x128xf32>
    %42 = arith.addf %40, %41 : vector<32x128xf32>
    %cst_15 = arith.constant dense<0.000000e+00> : vector<128xf32>
    %43 = vector.multi_reduction <add>, %42, %cst_15 [0] : vector<32x128xf32> to vector<128xf32>
    %44 = vector.shape_cast %43 : vector<128xf32> to vector<1x128xf32>
    %45 = arith.mulf %42, %42 : vector<32x128xf32>
    %cst_16 = arith.constant dense<0.000000e+00> : vector<128xf32>
    %46 = vector.multi_reduction <add>, %45, %cst_16 [0] : vector<32x128xf32> to vector<128xf32>
    %47 = vector.shape_cast %46 : vector<128xf32> to vector<1x128xf32>
    %c64_i32 = arith.constant 64 : i32
    %48 = tpu.dynamic_rotate %44 by %c64_i32 dim 1 : vector<1x128xf32>, i32 -> vector<1x128xf32>
    %49 = arith.addf %44, %48 : vector<1x128xf32>
    %c64_i32_17 = arith.constant 64 : i32
    %50 = tpu.dynamic_rotate %47 by %c64_i32_17 dim 1 : vector<1x128xf32>, i32 -> vector<1x128xf32>
    %51 = arith.addf %47, %50 : vector<1x128xf32>
    %c32_i32 = arith.constant 32 : i32
    %52 = tpu.dynamic_rotate %49 by %c32_i32 dim 1 : vector<1x128xf32>, i32 -> vector<1x128xf32>
    %53 = arith.addf %49, %52 : vector<1x128xf32>
    %c32_i32_18 = arith.constant 32 : i32
    %54 = tpu.dynamic_rotate %51 by %c32_i32_18 dim 1 : vector<1x128xf32>, i32 -> vector<1x128xf32>
    %55 = arith.addf %51, %54 : vector<1x128xf32>
    %c16_i32_19 = arith.constant 16 : i32
    %56 = tpu.dynamic_rotate %53 by %c16_i32_19 dim 1 : vector<1x128xf32>, i32 -> vector<1x128xf32>
    %57 = arith.addf %53, %56 : vector<1x128xf32>
    %c16_i32_20 = arith.constant 16 : i32
    %58 = tpu.dynamic_rotate %55 by %c16_i32_20 dim 1 : vector<1x128xf32>, i32 -> vector<1x128xf32>
    %59 = arith.addf %55, %58 : vector<1x128xf32>
    %c8_i32 = arith.constant 8 : i32
    %60 = tpu.dynamic_rotate %57 by %c8_i32 dim 1 : vector<1x128xf32>, i32 -> vector<1x128xf32>
    %61 = arith.addf %57, %60 : vector<1x128xf32>
    %c8_i32_21 = arith.constant 8 : i32
    %62 = tpu.dynamic_rotate %59 by %c8_i32_21 dim 1 : vector<1x128xf32>, i32 -> vector<1x128xf32>
    %63 = arith.addf %59, %62 : vector<1x128xf32>
    %cst_22 = arith.constant 0.001953125 : f32
    %64 = vector.broadcast %cst_22 : f32 to vector<1x128xf32>
    %65 = arith.mulf %61, %64 : vector<1x128xf32>
    %cst_23 = arith.constant 0.001953125 : f32
    %66 = vector.broadcast %cst_23 : f32 to vector<1x128xf32>
    %67 = arith.mulf %63, %66 : vector<1x128xf32>
    %68 = arith.mulf %65, %65 : vector<1x128xf32>
    %69 = arith.subf %67, %68 : vector<1x128xf32>
    %70 = vector.broadcast %65 : vector<1x128xf32> to vector<32x128xf32>
    %71 = arith.subf %42, %70 : vector<32x128xf32>
    %cst_24 = arith.constant 9.99999974E-6 : f32
    %72 = vector.broadcast %cst_24 : f32 to vector<1x128xf32>
    %73 = arith.addf %69, %72 : vector<1x128xf32>
    %74 = math.rsqrt %73 : vector<1x128xf32>
    %75 = vector.broadcast %74 : vector<1x128xf32> to vector<32x128xf32>
    %76 = arith.mulf %71, %75 : vector<32x128xf32>
    %cst_25 = arith.constant 0.000000e+00 : f32
    %77 = vector.broadcast %cst_25 : f32 to vector<32x128xf32>
    %78 = arith.maximumf %76, %77 : vector<32x128xf32>
    %cst_26 = arith.constant 0.000000e+00 : f32
    %79 = vector.broadcast %cst_26 : f32 to vector<32x128xf32>
    %c1_i32_27 = arith.constant 1 : i32
    %80 = tpu.dynamic_rotate %78 by %c1_i32_27 dim 0 : vector<32x128xf32>, i32 -> vector<32x128xf32>
    %81 = vector.shape_cast %20 : vector<32x1xi1> to vector<32x1xi1>
    %82 = vector.broadcast %81 : vector<32x1xi1> to vector<32x128xi1>
    %83 = arith.select %82, %79, %80 : vector<32x128xi1>, vector<32x128xf32>
    %c31_i32_28 = arith.constant 31 : i32
    %84 = tpu.dynamic_rotate %78 by %c31_i32_28 dim 0 : vector<32x128xf32>, i32 -> vector<32x128xf32>
    %85 = vector.shape_cast %22 : vector<32x1xi1> to vector<32x1xi1>
    %86 = vector.broadcast %85 : vector<32x1xi1> to vector<32x128xi1>
    %87 = arith.select %86, %79, %84 : vector<32x128xi1>, vector<32x128xf32>
    %88 = arith.truncf %78 : vector<32x128xf32> to vector<32x128xbf16>
    %89 = arith.truncf %83 : vector<32x128xf32> to vector<32x128xbf16>
    %90 = arith.truncf %87 : vector<32x128xf32> to vector<32x128xbf16>
    %c0_29 = arith.constant 0 : index
    %c0_30 = arith.constant 0 : index
    %91 = vector.load %arg4[%c0_29, %c0_30] : memref<128x128xbf16, #tpu.memory_space<vmem>>, vector<128x128xbf16>
    %cst_31 = arith.constant dense<0.000000e+00> : vector<32x128xf32>
    %92 = tpu.matmul %89, %91, %cst_31 {dimension_numbers = #tpu.dot_dimension_numbers<[1], [0], [0], [1], [0, 0, 1, 1], [], []>} : vector<32x128xbf16>, vector<128x128xbf16>, vector<32x128xf32> -> vector<32x128xf32>
    %c0_32 = arith.constant 0 : index
    %c0_33 = arith.constant 0 : index
    %93 = vector.load %arg5[%c0_32, %c0_33] : memref<128x128xbf16, #tpu.memory_space<vmem>>, vector<128x128xbf16>
    %cst_34 = arith.constant dense<0.000000e+00> : vector<32x128xf32>
    %94 = tpu.matmul %88, %93, %cst_34 {dimension_numbers = #tpu.dot_dimension_numbers<[1], [0], [0], [1], [0, 0, 1, 1], [], []>} : vector<32x128xbf16>, vector<128x128xbf16>, vector<32x128xf32> -> vector<32x128xf32>
    %95 = arith.addf %92, %94 : vector<32x128xf32>
    %c0_35 = arith.constant 0 : index
    %c0_36 = arith.constant 0 : index
    %96 = vector.load %arg6[%c0_35, %c0_36] : memref<128x128xbf16, #tpu.memory_space<vmem>>, vector<128x128xbf16>
    %cst_37 = arith.constant dense<0.000000e+00> : vector<32x128xf32>
    %97 = tpu.matmul %90, %96, %cst_37 {dimension_numbers = #tpu.dot_dimension_numbers<[1], [0], [0], [1], [0, 0, 1, 1], [], []>} : vector<32x128xbf16>, vector<128x128xbf16>, vector<32x128xf32> -> vector<32x128xf32>
    %98 = arith.addf %95, %97 : vector<32x128xf32>
    %cst_38 = arith.constant dense<0.000000e+00> : vector<128xf32>
    %99 = vector.multi_reduction <add>, %98, %cst_38 [0] : vector<32x128xf32> to vector<128xf32>
    %100 = vector.shape_cast %99 : vector<128xf32> to vector<1x128xf32>
    %101 = arith.mulf %98, %98 : vector<32x128xf32>
    %cst_39 = arith.constant dense<0.000000e+00> : vector<128xf32>
    %102 = vector.multi_reduction <add>, %101, %cst_39 [0] : vector<32x128xf32> to vector<128xf32>
    %103 = vector.shape_cast %102 : vector<128xf32> to vector<1x128xf32>
    %c64_i32_40 = arith.constant 64 : i32
    %104 = tpu.dynamic_rotate %100 by %c64_i32_40 dim 1 : vector<1x128xf32>, i32 -> vector<1x128xf32>
    %105 = arith.addf %100, %104 : vector<1x128xf32>
    %c64_i32_41 = arith.constant 64 : i32
    %106 = tpu.dynamic_rotate %103 by %c64_i32_41 dim 1 : vector<1x128xf32>, i32 -> vector<1x128xf32>
    %107 = arith.addf %103, %106 : vector<1x128xf32>
    %c32_i32_42 = arith.constant 32 : i32
    %108 = tpu.dynamic_rotate %105 by %c32_i32_42 dim 1 : vector<1x128xf32>, i32 -> vector<1x128xf32>
    %109 = arith.addf %105, %108 : vector<1x128xf32>
    %c32_i32_43 = arith.constant 32 : i32
    %110 = tpu.dynamic_rotate %107 by %c32_i32_43 dim 1 : vector<1x128xf32>, i32 -> vector<1x128xf32>
    %111 = arith.addf %107, %110 : vector<1x128xf32>
    %c16_i32_44 = arith.constant 16 : i32
    %112 = tpu.dynamic_rotate %109 by %c16_i32_44 dim 1 : vector<1x128xf32>, i32 -> vector<1x128xf32>
    %113 = arith.addf %109, %112 : vector<1x128xf32>
    %c16_i32_45 = arith.constant 16 : i32
    %114 = tpu.dynamic_rotate %111 by %c16_i32_45 dim 1 : vector<1x128xf32>, i32 -> vector<1x128xf32>
    %115 = arith.addf %111, %114 : vector<1x128xf32>
    %c8_i32_46 = arith.constant 8 : i32
    %116 = tpu.dynamic_rotate %113 by %c8_i32_46 dim 1 : vector<1x128xf32>, i32 -> vector<1x128xf32>
    %117 = arith.addf %113, %116 : vector<1x128xf32>
    %c8_i32_47 = arith.constant 8 : i32
    %118 = tpu.dynamic_rotate %115 by %c8_i32_47 dim 1 : vector<1x128xf32>, i32 -> vector<1x128xf32>
    %119 = arith.addf %115, %118 : vector<1x128xf32>
    %cst_48 = arith.constant 0.001953125 : f32
    %120 = vector.broadcast %cst_48 : f32 to vector<1x128xf32>
    %121 = arith.mulf %117, %120 : vector<1x128xf32>
    %cst_49 = arith.constant 0.001953125 : f32
    %122 = vector.broadcast %cst_49 : f32 to vector<1x128xf32>
    %123 = arith.mulf %119, %122 : vector<1x128xf32>
    %124 = arith.mulf %121, %121 : vector<1x128xf32>
    %125 = arith.subf %123, %124 : vector<1x128xf32>
    %126 = vector.broadcast %121 : vector<1x128xf32> to vector<32x128xf32>
    %127 = arith.subf %98, %126 : vector<32x128xf32>
    %cst_50 = arith.constant 9.99999974E-6 : f32
    %128 = vector.broadcast %cst_50 : f32 to vector<1x128xf32>
    %129 = arith.addf %125, %128 : vector<1x128xf32>
    %130 = math.rsqrt %129 : vector<1x128xf32>
    %131 = vector.broadcast %130 : vector<1x128xf32> to vector<32x128xf32>
    %132 = arith.mulf %127, %131 : vector<32x128xf32>
    %133 = vector.extract_strided_slice %35 {offsets = [0, 128], sizes = [32, 128], strides = [1, 1]} : vector<32x256xf32> to vector<32x128xf32>
    %cst_51 = arith.constant dense<0.000000e+00> : vector<128xf32>
    %134 = vector.multi_reduction <add>, %133, %cst_51 [0] : vector<32x128xf32> to vector<128xf32>
    %135 = vector.shape_cast %134 : vector<128xf32> to vector<1x128xf32>
    %136 = arith.mulf %133, %133 : vector<32x128xf32>
    %cst_52 = arith.constant dense<0.000000e+00> : vector<128xf32>
    %137 = vector.multi_reduction <add>, %136, %cst_52 [0] : vector<32x128xf32> to vector<128xf32>
    %138 = vector.shape_cast %137 : vector<128xf32> to vector<1x128xf32>
    %c64_i32_53 = arith.constant 64 : i32
    %139 = tpu.dynamic_rotate %135 by %c64_i32_53 dim 1 : vector<1x128xf32>, i32 -> vector<1x128xf32>
    %140 = arith.addf %135, %139 : vector<1x128xf32>
    %c64_i32_54 = arith.constant 64 : i32
    %141 = tpu.dynamic_rotate %138 by %c64_i32_54 dim 1 : vector<1x128xf32>, i32 -> vector<1x128xf32>
    %142 = arith.addf %138, %141 : vector<1x128xf32>
    %c32_i32_55 = arith.constant 32 : i32
    %143 = tpu.dynamic_rotate %140 by %c32_i32_55 dim 1 : vector<1x128xf32>, i32 -> vector<1x128xf32>
    %144 = arith.addf %140, %143 : vector<1x128xf32>
    %c32_i32_56 = arith.constant 32 : i32
    %145 = tpu.dynamic_rotate %142 by %c32_i32_56 dim 1 : vector<1x128xf32>, i32 -> vector<1x128xf32>
    %146 = arith.addf %142, %145 : vector<1x128xf32>
    %c16_i32_57 = arith.constant 16 : i32
    %147 = tpu.dynamic_rotate %144 by %c16_i32_57 dim 1 : vector<1x128xf32>, i32 -> vector<1x128xf32>
    %148 = arith.addf %144, %147 : vector<1x128xf32>
    %c16_i32_58 = arith.constant 16 : i32
    %149 = tpu.dynamic_rotate %146 by %c16_i32_58 dim 1 : vector<1x128xf32>, i32 -> vector<1x128xf32>
    %150 = arith.addf %146, %149 : vector<1x128xf32>
    %c8_i32_59 = arith.constant 8 : i32
    %151 = tpu.dynamic_rotate %148 by %c8_i32_59 dim 1 : vector<1x128xf32>, i32 -> vector<1x128xf32>
    %152 = arith.addf %148, %151 : vector<1x128xf32>
    %c8_i32_60 = arith.constant 8 : i32
    %153 = tpu.dynamic_rotate %150 by %c8_i32_60 dim 1 : vector<1x128xf32>, i32 -> vector<1x128xf32>
    %154 = arith.addf %150, %153 : vector<1x128xf32>
    %cst_61 = arith.constant 0.001953125 : f32
    %155 = vector.broadcast %cst_61 : f32 to vector<1x128xf32>
    %156 = arith.mulf %152, %155 : vector<1x128xf32>
    %cst_62 = arith.constant 0.001953125 : f32
    %157 = vector.broadcast %cst_62 : f32 to vector<1x128xf32>
    %158 = arith.mulf %154, %157 : vector<1x128xf32>
    %159 = arith.mulf %156, %156 : vector<1x128xf32>
    %160 = arith.subf %158, %159 : vector<1x128xf32>
    %161 = vector.broadcast %156 : vector<1x128xf32> to vector<32x128xf32>
    %162 = arith.subf %133, %161 : vector<32x128xf32>
    %cst_63 = arith.constant 9.99999974E-6 : f32
    %163 = vector.broadcast %cst_63 : f32 to vector<1x128xf32>
    %164 = arith.addf %160, %163 : vector<1x128xf32>
    %165 = math.rsqrt %164 : vector<1x128xf32>
    %166 = vector.broadcast %165 : vector<1x128xf32> to vector<32x128xf32>
    %167 = arith.mulf %162, %166 : vector<32x128xf32>
    %168 = arith.addf %132, %167 : vector<32x128xf32>
    %cst_64 = arith.constant 0.000000e+00 : f32
    %169 = vector.broadcast %cst_64 : f32 to vector<32x128xf32>
    %170 = arith.maximumf %168, %169 : vector<32x128xf32>
    %171 = arith.truncf %170 : vector<32x128xf32> to vector<32x128xbf16>
    %c0_65 = arith.constant 0 : index
    %c0_66 = arith.constant 0 : index
    %172 = vector.load %arg7[%c0_65, %c0_66] : memref<32x128xbf16, #tpu.memory_space<vmem>>, vector<32x128xbf16>
    tpu.vector_store %arg7[%c0_65, %c0_66], %171 {strides = array<i32>} : memref<32x128xbf16, #tpu.memory_space<vmem>>, vector<32x128xbf16>,
    return
  }
}

</mosaic_0001>

<bundles_post_ra>
// kernel: tpu_custom_call.1
= control target key start
LH: loop header
LB: loop body
LE: loop exit
PB: predicated region body
PF: predicated region fallthrough
CT: control target
= control target key end

     0   :  { %12 = vsyncpa [#allocation3], 0  ;;  %s1931_s0 = inlined_call_operand.hbm [shape: bf16[32,64], index: 0, kind: input, shape index: {}]   ;;  %s1932_s1 = inlined_call_operand.hbm [shape: bf16[64,128], index: 1, kind: input, shape index: {}]   ;;  %s1933_s2 = inlined_call_operand.hbm [shape: bf16[64,256], index: 2, kind: input, shape index: {}]   ;;  %s1934_s3 = inlined_call_operand.hbm [shape: bf16[64,128], index: 3, kind: input, shape index: {}]   ;;  %s1935_s4 = inlined_call_operand.hbm [shape: bf16[128,128], index: 4, kind: input, shape index: {}]   ;;  %s1936_s5 = inlined_call_operand.hbm [shape: bf16[128,128], index: 5, kind: input, shape index: {}]   ;;  %s1937_s6 = inlined_call_operand.hbm [shape: bf16[128,128], index: 6, kind: input, shape index: {}]   ;;  %s1938_s7 = inlined_call_operand.hbm [shape: bf16[32,128], index: 7, kind: output, shape index: {}]  }
   0x1   :  { %13 = vsyncpa [#allocation6], 0 }
   0x2   :  { %14 = vsyncpa [#allocation9], 0 }
   0x3   :  { %15 = vsyncpa [#allocation12], 0 }
   0x4   :  { %16 = vsyncpa [#allocation4], 0  ;;  %s1612_s24 = smov [#allocation5]   ;;  %s1613_s26 = smov [#allocation8]  }
   0x5   :  { %s34_s25 = sshll.u32 %s1612_s24, 4  ;;  %s58_s27 = sshll.u32 %s1613_s26, 4  ;;  %s35_s25 = int_to_ptr.vmem [resolvable:$true] %s34_s25  ;;  %s59_s27 = int_to_ptr.vmem [resolvable:$true] %s58_s27 }
   0x6   :  { %s1450_s28 = scalar_lea.vmem %s35_s25, 512  ;;  %p1455_p1 = scmp.lt.s32.totalorder %s35_s25, %s35_s25 }
   0x7   :  { %p1451_p0 = scmp.ne.s32.totalorder %s35_s25, %s1450_s28  ;;  %p1456_p2 = scmp.lt.s32.totalorder %s1450_s28, %s1450_s28 }
   0x9   :  { %p1457_p3 = por %p1456_p2, %p1455_p1 }
   0xb   :  { %p1458_p4 = pnand %p1457_p3, %p1451_p0 }
   0xd   :  { %1461 = shalt.err (!%p1458_p4)
}
   0xe   :  { %s1614_s29 = smov 64   ;;  %s1615_s30 = smov 4  }
   0xf   :  { %40 = dma.hbm_to_vmem [thread:$0]  %s1932_s1, 512, %s35_s25, [#allocation6], %s1614_s29, %s1614_s29, %s1615_s30  }
  0x10   :  { %s1470_s10 = scalar_lea.vmem %s59_s27, 512  ;;  %p1475_p6 = scmp.lt.s32.totalorder %s59_s27, %s59_s27 }
  0x11   :  { %p1471_p5 = scmp.ne.s32.totalorder %s59_s27, %s1470_s10  ;;  %p1476_p7 = scmp.lt.s32.totalorder %s1470_s10, %s1470_s10 }
  0x13   :  { %p1477_p8 = por %p1476_p7, %p1475_p6 }
  0x15   :  { %p1478_p9 = pnand %p1477_p8, %p1471_p5 }
  0x17   :  { %1481 = shalt.err (!%p1478_p9)
}
  0x18   :  { %64 = dma.hbm_to_vmem [thread:$0]  %s1934_s3, 512, %s59_s27, [#allocation9], %s1614_s29, %s1614_s29, %s1615_s30  }
  0x19   :  { %s1616_s13 = smov [#allocation11]   ;;  %s1617_s15 = smov [#allocation2]  }
  0x1a   :  { %s82_s14 = sshll.u32 %s1616_s13, 4  ;;  %s22_s16 = sshll.u32 %s1617_s15, 4  ;;  %s83_s14 = int_to_ptr.vmem [resolvable:$true] %s82_s14  ;;  %s23_s16 = int_to_ptr.vmem [resolvable:$true] %s22_s16 }
  0x1b   :  { %s1490_s1 = scalar_lea.vmem %s83_s14, 1024  ;;  %p1495_p11 = scmp.lt.s32.totalorder %s83_s14, %s83_s14 }
  0x1c   :  { %p1491_p10 = scmp.ne.s32.totalorder %s83_s14, %s1490_s1  ;;  %p1496_p12 = scmp.lt.s32.totalorder %s1490_s1, %s1490_s1 }
  0x1e   :  { %p1497_p13 = por %p1496_p12, %p1495_p11 }
  0x20   :  { %p1498_p0 = pnand %p1497_p13, %p1491_p10 }
  0x22   :  { %1501 = shalt.err (!%p1498_p0)
}
  0x23   :  { %88 = dma.hbm_to_vmem [thread:$0]  %s1936_s5, 1024, %s83_s14, [#allocation12], %s1614_s29, %s1614_s29, %s1615_s30  }
  0x24   :  { %s1510_s3 = scalar_lea.vmem %s23_s16, 256  ;;  %p1515_p2 = scmp.lt.s32.totalorder %s23_s16, %s23_s16 }
  0x25   :  { %p1511_p1 = scmp.ne.s32.totalorder %s23_s16, %s1510_s3  ;;  %p1516_p3 = scmp.lt.s32.totalorder %s1510_s3, %s1510_s3 }
  0x27   :  { %p1517_p4 = por %p1516_p3, %p1515_p2 }
  0x29   :  { %p1518_p5 = pnand %p1517_p4, %p1511_p1 }
  0x2b   :  { %1521 = shalt.err (!%p1518_p5)
}
  0x2c   :  { %28 = dma.hbm_to_vmem [thread:$0]  %s1931_s0, 256, %s23_s16, [#allocation3], %s1614_s29, %s1614_s29, %s1615_s30  }
  0x2d   :  { %s1618_s21 = smov [#allocation7]  }
  0x2e   :  { %s46_s22 = sshll.u32 %s1618_s21, 4  ;;  %s47_s22 = int_to_ptr.vmem [resolvable:$true] %s46_s22 }
  0x2f   :  { %s1530_s23 = scalar_lea.vmem %s47_s22, 1024  ;;  %p1535_p7 = scmp.lt.s32.totalorder %s47_s22, %s47_s22 }
  0x30   :  { %p1531_p6 = scmp.ne.s32.totalorder %s47_s22, %s1530_s23  ;;  %p1536_p8 = scmp.lt.s32.totalorder %s1530_s23, %s1530_s23 }
  0x32   :  { %p1537_p9 = por %p1536_p8, %p1535_p7 }
  0x34   :  { %p1538_p10 = pnand %p1537_p9, %p1531_p6 }
  0x36   :  { %1541 = shalt.err (!%p1538_p10)
}
  0x37   :  { %s1619_s5 = smov 128   ;;  %s1620_s24 = smov 8  }
  0x38   :  { %52 = dma.hbm_to_vmem [thread:$0]  %s1933_s2, 1024, %s47_s22, [#allocation6], %s1619_s5, %s1619_s5, %s1620_s24  }
  0x39   :  { %s1621_s27 = smov [#allocation10]   ;;  %s1622_s0 = smov [#allocation13]  }
  0x3a   :  { %s70_s28 = sshll.u32 %s1621_s27, 4  ;;  %s94_s8 = sshll.u32 %s1622_s0, 4  ;;  %s71_s28 = int_to_ptr.vmem [resolvable:$true] %s70_s28  ;;  %s95_s8 = int_to_ptr.vmem [resolvable:$true] %s94_s8 }
  0x3b   :  { %s1550_s9 = scalar_lea.vmem %s71_s28, 1024  ;;  %p1555_p12 = scmp.lt.s32.totalorder %s71_s28, %s71_s28 }
  0x3c   :  { %p1551_p11 = scmp.ne.s32.totalorder %s71_s28, %s1550_s9  ;;  %p1556_p13 = scmp.lt.s32.totalorder %s1550_s9, %s1550_s9 }
  0x3e   :  { %p1557_p0 = por %p1556_p13, %p1555_p12 }
  0x40   :  { %p1558_p1 = pnand %p1557_p0, %p1551_p11 }
  0x42   :  { %1561 = shalt.err (!%p1558_p1)
}
  0x43   :  { %76 = dma.hbm_to_vmem [thread:$0]  %s1935_s4, 1024, %s71_s28, [#allocation9], %s1614_s29, %s1614_s29, %s1615_s30  }
  0x44   :  { %s1570_s2 = scalar_lea.vmem %s95_s8, 1024  ;;  %p1575_p3 = scmp.lt.s32.totalorder %s95_s8, %s95_s8 }
  0x45   :  { %p1571_p2 = scmp.ne.s32.totalorder %s95_s8, %s1570_s2  ;;  %p1576_p4 = scmp.lt.s32.totalorder %s1570_s2, %s1570_s2 }
  0x47   :  { %p1577_p5 = por %p1576_p4, %p1575_p3 }
  0x49   :  { %p1578_p6 = pnand %p1577_p5, %p1571_p2 }
  0x4b   :  { %1581 = shalt.err (!%p1578_p6)
}
  0x4c   :  { %100 = dma.hbm_to_vmem [thread:$0]  %s1937_s6, 1024, %s95_s8, [#allocation12], %s1614_s29, %s1614_s29, %s1615_s30  }
  0x4d   :  { %1602 = dma.done.wait [#allocation3], 256  }
  0x4e   :  { %1603 = vsyncadd [#allocation3], 4294967040 }
  0x4f   :  { %1604 = dma.done.wait [#allocation6], 1536  }
  0x50   :  { %1605 = vsyncadd [#allocation6], 4294965760 }
  0x51   :  { %1606 = dma.done.wait [#allocation9], 1536  }
  0x52   :  { %1607 = vsyncadd [#allocation9], 4294965760 }
  0x53   :  { %1608 = dma.done.wait [#allocation12], 2048  }
  0x54   :  { %1609 = vsyncadd [#allocation12], 4294965248  ;;  %v1623_v0 = vmov 0   ;;  %v131_v1 = vlaneseq  ;;  %v1388_v3 = vld [vmem:[#allocation7 + $0x34] ss:$8 sps:$4 sm:$0xff]   ;;  %vm296_vm2 = vcmask 523264  }
  0x55   :  { %335 = vmatprep.mubr.bf16.mxu0 %v1623_v0  ;;  %v1390_v4 = vld [vmem:[#allocation7 + $0x30] ss:$8 sps:$4 sm:$0xff]   ;;  %311 = vmatprep.subr.bf16.mxu0 %v1388_v3  ;;  %v1391_v6 = vld [vmem:[#allocation7 + $0x24] ss:$8 sps:$4 sm:$0xff]   ;;  %v1393_v8 = vld [vmem:[#allocation7 + $0x20] ss:$8 sps:$4 sm:$0xff]  }
  0x56   :  { %v1709_v2 = vshrl.u32 %v131_v1, 7  ;;  %312 = vmatpush1.bf16.msra.mxu0 %v1390_v4  ;;  %v1394_v9 = vld [vmem:[#allocation7 + $0x14] ss:$8 sps:$4 sm:$0xff]   ;;  %v1396_v14 = vld [vmem:[#allocation7 + $0x10] ss:$8 sps:$4 sm:$0xff]   ;;  %v1404_v23 = vld [vmem:[#allocation8 + $0x8] sm:$0xff]  }
  0x57   :  { %313 = vmatprep.subr.bf16.mxu0 %v1391_v6  ;;  %v1397_v11 = vld [vmem:[#allocation8 + $0x18] sm:$0xff]   ;;  %v1401_v15 = vld [vmem:[#allocation8 + $0x10] sm:$0xff]   ;;  %v1398_v19 = vld [vmem:[#allocation7 + $0x4] ss:$8 sps:$4 sm:$0xff]   ;;  %s1624_s4 = smov 32   ;;  %s1625_s6 = smov 16  }
  0x58   :  { %v134_v5 = vadd.s32 16, %v1709_v2  ;;  %v133_v7 = vadd.s32 8, %v1709_v2  ;;  %v135_v10 = vadd.s32 24, %v1709_v2  ;;  %vm196_vm0 = vcmp.lt.s32.totalorder %v1709_v2, 1  ;;  %1288 = vmatprep.subr.bf16.mxu1 %v1397_v11  ;;  %v123_v16 = vld [vmem:[#allocation2] sm:$0xff]   ;;  %v1403_v25 = vld [vmem:[#allocation5 + $0x18] sm:$0xff]  }
  0x59   :  { %vm217_vm1 = vcmp.lt.s32.totalorder %v1709_v2, 7  ;;  %v140_v13 = vand.u32 15, %v1709_v2  ;;  %1289 = vmatpush3.bf16.msra.mxu1 %v1397_v11  ;;  %v127_v20 = vunpack.c.l.bf16 %v123_v16  ;;  %v128_v21 = vunpack.c.h.bf16 %v123_v16  ;;  %v1400_v22 = vld [vmem:[#allocation7] ss:$8 sps:$4 sm:$0xff]   ;;  %v125_v28 = vld [vmem:[#allocation2 + $0x8] sm:$0xff]   ;;  %v1405_v37 = vld [vmem:[#allocation5 + $0x10] sm:$0xff]  }
  0x5a   :  { %v154_v12 = vand.u32 15, %v134_v5  ;;  %314 = vmatpush1.bf16.msra.mxu0 %v1393_v8  ;;  %v147_v17 = vand.u32 15, %v133_v7  ;;  %v161_v18 = vand.u32 15, %v135_v10  ;;  %1290 = vmatprep.subr.bf16.mxu1 %v1401_v15  ;;  %v1406_v27 = vld [vmem:[#allocation8] sm:$0xff]   ;;  %v129_v31 = vunpack.c.l.bf16 %v125_v28  ;;  %v1408_v48 = vld [vmem:[#allocation5 + $0x8] sm:$0xff]   ;;  %v1431_v26 = vld [vmem:[#allocation13 + $0x10] sm:$0xff]  }
  0x5b   :  { %315 = vmatprep.subr.bf16.mxu0 %v1394_v9  ;;  %vm1717_vm3 = vcmp.eq.s32.totalorder %v140_v13, 0  ;;  %v213_v30 = vrot.slane %v127_v20, 1  ;;  %v130_v32 = vunpack.c.h.bf16 %v125_v28  ;;  %v193_v33 = vrot.slane %v128_v21, 7  ;;  %v1409_v56 = vld [vmem:[#allocation5] sm:$0xff]   ;;  %s1627_s14 = smov [#allocation14]  }
  0x5c   :  { %vm1721_vm4 = vcmp.eq.s32.totalorder %v154_v12, 0  ;;  %vm1725_vm5 = vcmp.eq.s32.totalorder %v147_v17, 15  ;;  %v214_v34 = vrot.slane %v128_v21, 1  ;;  %v192_v35 = vrot.slane %v127_v20, 7  ;;  %vm1203_vm7 = vmneg %vm1717_vm3  ;;  %s1148_s15 = sshll.u32 %s1627_s14, 4  ;;  %s1149_s15 = int_to_ptr.vmem [resolvable:$true] %s1148_s15 }
  0x5d   :  { %1291 = vmatpush3.bf16.msra.mxu1 %v1401_v15  ;;  %vm1729_vm6 = vcmp.eq.s32.totalorder %v161_v18, 15  ;;  %v194_v38 = vrot.slane %v129_v31, 7  ;;  %v195_v39 = vrot.slane %v130_v32, 7  ;;  %v216_v40 = vrot.slane %v130_v32, 1  ;;  %vm1219_vm8 = vmneg %vm1725_vm5  ;;  %s1582_s16 = scalar_lea.vmem %s1149_s15, 256  ;;  %p1587_p8 = scmp.lt.s32.totalorder %s1149_s15, %s1149_s15 }
  0x5e   :  { %316 = vmatpush1.bf16.msra.mxu0 %v1396_v14  ;;  %1292 = vmatprep.subr.bf16.mxu1 %v1404_v23  ;;  %v215_v41 = vrot.slane %v129_v31, 1  ;;  %v220_v42 = vsel %vm217_vm1, %v213_v30, %v214_v34  ;;  %v199_v55 = vsel %vm196_vm0, %v192_v35, %v193_v33  ;;  %vm1207_vm9 = vmneg %vm1721_vm4  ;;  %vm1626_vm10 = vmmov 1   ;;  %p1583_p7 = scmp.ne.s32.totalorder %s1149_s15, %s1582_s16  ;;  %p1588_p9 = scmp.lt.s32.totalorder %s1582_s16, %s1582_s16 }
  0x5f   :  { %317 = vmatprep.subr.bf16.mxu0 %v1398_v19  ;;  %v198_v43 = vsel %vm196_vm0, %v193_v33, %v194_v38  ;;  %v221_v47 = vsel %vm217_vm1, %v216_v40, %v213_v30  ;;  %v200_v51 = vsel %vm196_vm0, %v195_v39, %v192_v35  ;;  %v197_v58 = vsel %vm196_vm0, %v194_v38, %v195_v39  ;;  %vm1838_vm11 = vmpackc.low %vm1626_vm10, %vm1203_vm7 }
  0x60   :  { %v219_v44 = vsel %vm217_vm1, %v214_v34, %v215_v41  ;;  %v218_v46 = vsel %vm217_vm1, %v215_v41, %v216_v40  ;;  %v233_v50 = vsel %vm1729_vm6, 0.0, %v221_v47  ;;  %v211_v52 = vsel %vm1721_vm4, 0.0, %v198_v43  ;;  %vm1220_vm12 = vmpackc.low %vm1219_vm8, %vm1626_vm10  ;;  %p1589_p10 = por %p1588_p9, %p1587_p8 }
  0x61   :  { %1293 = vmatpush3.bf16.msra.mxu1 %v1404_v23  ;;  %v231_v45 = vsel %vm1725_vm5, 0.0, %v219_v44  ;;  %v237_v53 = vpack.c.bf16 %v233_v50, %v218_v46  ;;  %v209_v54 = vsel %vm1717_vm3, 0.0, %v200_v51  ;;  %v235_v59 = vpack.c.bf16 %v197_v58, %v211_v52  ;;  %vm1208_vm13 = vmpackc.low %vm1626_vm10, %vm1207_vm9 }
  0x62   :  { %318 = vmatpush1.bf16.msra.mxu0 %v1400_v22  ;;  %1294 = vmatprep.subr.bf16.mxu1 %v1406_v27  ;;  %v236_v49 = vpack.c.bf16 %v231_v45, %v220_v42  ;;  %v234_v57 = vpack.c.bf16 %v199_v55, %v209_v54  ;;  %vm1223_vm14 = vmneg %vm1729_vm6  ;;  %p1590_p11 = pnand %p1589_p10, %p1583_p7 }
  0x63   :  { %1300 = vmatprep.subr.bf16.mxu0 %v1403_v25  ;;  %vm1224_vm15 = vmpackc.low %vm1223_vm14, %vm1626_vm10 }
  0x64   :  { %1296 = vmatprep.mubr.msk.bf16.mxu1 %vm296_vm2, %v236_v49 }
  0x65   :  { %1173 = vmatmul.mubr.msk.bf16.vlgmr.msra.gmra.mxu0 %vm296_vm2, %v123_v16  ;;  %1295 = vmatpush3.bf16.msra.mxu1 %v1406_v27 }
  0x66   :  { %1301 = vmatpush3.bf16.msra.mxu0 %v1403_v25  ;;  %345 = vmatprep.mubr.bf16.mxu0 %v1623_v0 }
  0x67   :  { %1302 = vmatprep.subr.bf16.mxu0 %v1405_v37 }
  0x68   :  { %1297 = vmatmul.mubr.msk.bf16.vlgmr.msra.gmra.mxu1 %vm296_vm2, %v237_v53 }
  0x6a   :  { %1303 = vmatpush3.bf16.msra.mxu0 %v1405_v37 }
  0x6b   :  { %1304 = vmatprep.subr.bf16.mxu0 %v1408_v48 }
  0x6d   :  { %1174 = vmatmul.mubr.msk.bf16.gmra.mxu0 %vm296_vm2, %v125_v28 }
  0x6e   :  { %1305 = vmatpush3.bf16.msra.mxu0 %v1408_v48  ;;  %1308 = vmatprep.mubr.msk.bf16.mxu0 %vm296_vm2, %v234_v57 }
  0x6f   :  { %1306 = vmatprep.subr.bf16.mxu0 %v1409_v56 }
  0x72   :  { %1307 = vmatpush3.bf16.msra.mxu0 %v1409_v56 }
  0x75   :  { %1309 = vmatmul.mubr.msk.bf16.vlgmr.msra.gmra.mxu0 %vm296_vm2, %v235_v59 }
 0x125   :  { %v337_v60 = vpop.f32.mrf.mxu0 }
 0x127   :  { %v1764_v61 = vpop.f32.mrf.mxu0 }
 0x128   :  { %v1298_v3 = vpop.f32.mrf.mxu1  ;;  %v1056_v57 = vmul.f32 %v1764_v61, %v1764_v61 }
 0x129   :  { %v341_v62 = vpop.f32.mrf.mxu0 }
 0x12a   :  { %v436_v5 = vpop.f32.mrf.mxu1 }
 0x12b   :  { %v1766_v63 = vpop.f32.mrf.mxu0 }
 0x12c   :  { %v1299_v8 = vpop.f32.mrf.mxu1  ;;  %v1047_v55 = vadd.f32 %v1766_v63, %v1764_v61  ;;  %v1057_v56 = vmul.f32 %v1766_v63, %v1766_v63 }
 0x12d   :  { %v347_v0 = vpop.f32.mrf.mxu0 }
 0x12e   :  { %v439_v13 = vpop.f32.mrf.mxu1 }
 0x12f   :  { %v1768_v1 = vpop.f32.mrf.mxu0 }
 0x130   :  { %v1048_v58 = vadd.f32 %v1047_v55, %v1768_v1  ;;  %v1058_v59 = vmul.f32 %v1768_v1, %v1768_v1 }
 0x131   :  { %v351_v4 = vpop.f32.mrf.mxu0 }
 0x133   :  { %v1770_v6 = vpop.f32.mrf.mxu0 }
 0x135   :  { %v1310_v7 = vpop.f32.mrf.mxu0 }
 0x136   :  { %v524_v12 = vadd.f32 %v1310_v7, %v1298_v3  ;;  %v1410_v7 = vld [vmem:[#allocation11 + $0x38] sm:$0xff]  }
 0x137   :  { %v515_v9 = vpop.f32.mrf.mxu0  ;;  %1312 = vmatprep.subr.bf16.mxu1 %v1410_v7 }
 0x138   :  { %v516_v10 = vadd.f32 %v515_v9, %v436_v5  ;;  %v1774_v18 = vadd.f32 %v524_v12, %v347_v0  ;;  %v1059_v0 = vmul.f32 %v1770_v6, %v1770_v6  ;;  %1313 = vmatpush3.bf16.msra.mxu1 %v1410_v7 }
 0x139   :  { %v1311_v11 = vpop.f32.mrf.mxu0 }
 0x13a   :  { %v1772_v15 = vadd.f32 %v516_v10, %v337_v60  ;;  %v527_v16 = vadd.f32 %v1311_v11, %v1299_v8  ;;  %v545_v25 = vmul.f32 %v1774_v18, %v1774_v18  ;;  %v1060_v60 = vadd.f32 %v1057_v56, %v1056_v57  ;;  %v1411_v10 = vld [vmem:[#allocation11 + $0x30] sm:$0xff]   ;;  %v1412_v11 = vld [vmem:[#allocation10 + $0x38] sm:$0xff]  }
 0x13b   :  { %v518_v14 = vpop.f32.mrf.mxu0  ;;  %1314 = vmatprep.subr.bf16.mxu1 %v1411_v10  ;;  %1332 = vmatprep.subr.bf16.mxu0 %v1412_v11 }
 0x13c   :  { %v519_v17 = vadd.f32 %v518_v14, %v439_v13  ;;  %v543_v20 = vmul.f32 %v1772_v15, %v1772_v15  ;;  %v1780_v21 = vadd.f32 %v527_v16, %v351_v4  ;;  %v1061_v3 = vadd.f32 %v1060_v60, %v1058_v59  ;;  %1315 = vmatpush3.bf16.msra.mxu1 %v1411_v10  ;;  %v1413_v14 = vld [vmem:[#allocation11 + $0x28] sm:$0xff]   ;;  %v1414_v16 = vld [vmem:[#allocation10 + $0x30] sm:$0xff]  }
 0x13d   :  { %1333 = vmatpush3.bf16.msra.mxu0 %v1412_v11  ;;  %1316 = vmatprep.subr.bf16.mxu1 %v1413_v14  ;;  %v1823_v60 = vsub.s32 0, %v1709_v2 }
 0x13e   :  { %v1776_v19 = vadd.f32 %v519_v17, %v341_v62  ;;  %v546_v30 = vmul.f32 %v1780_v21, %v1780_v21  ;;  %v1049_v62 = vadd.f32 %v1048_v58, %v1770_v6  ;;  %v1062_v5 = vadd.f32 %v1061_v3, %v1059_v0  ;;  %1334 = vmatprep.subr.bf16.mxu0 %v1414_v16 }
 0x140   :  { %v534_v22 = vadd.f32 %v1776_v19, %v1772_v15  ;;  %v544_v23 = vmul.f32 %v1776_v19, %v1776_v19  ;;  %v1050_v4 = vrot.slane %v1049_v62, 4  ;;  %v1063_v9 = vrot.slane %v1062_v5, 4  ;;  %1317 = vmatpush3.bf16.msra.mxu1 %v1413_v14 }
 0x141   :  { %1335 = vmatpush3.bf16.msra.mxu0 %v1414_v16 }
 0x142   :  { %v535_v27 = vadd.f32 %v534_v22, %v1774_v18  ;;  %v547_v28 = vadd.f32 %v544_v23, %v543_v20  ;;  %v1051_v8 = vadd.f32 %v1050_v4, %v1049_v62  ;;  %v1064_v13 = vadd.f32 %v1063_v9, %v1062_v5 }
 0x144   :  { %v536_v31 = vadd.f32 %v535_v27, %v1780_v21  ;;  %v548_v32 = vadd.f32 %v547_v28, %v545_v25  ;;  %v1052_v12 = vrot.slane %v1051_v8, 2  ;;  %v1065_v23 = vrot.slane %v1064_v13, 2  ;;  %v1415_v25 = vld [vmem:[#allocation11 + $0x20] sm:$0xff]   ;;  %v1416_v27 = vld [vmem:[#allocation10 + $0x28] sm:$0xff]  }
 0x145   :  { %1318 = vmatprep.subr.bf16.mxu1 %v1415_v25  ;;  %1336 = vmatprep.subr.bf16.mxu0 %v1416_v27 }
 0x146   :  { %v537_v33 = vrot.slane %v536_v31, 4  ;;  %v549_v34 = vadd.f32 %v548_v32, %v546_v30  ;;  %v1053_v22 = vadd.f32 %v1052_v12, %v1051_v8  ;;  %v1417_v30 = vld [vmem:[#allocation11 + $0x18] sm:$0xff]   ;;  %1319 = vmatpush3.bf16.msra.mxu1 %v1415_v25  ;;  %1337 = vmatpush3.bf16.msra.mxu0 %v1416_v27  ;;  %v1427_v25 = vld [vmem:[#allocation13 + $0x30] sm:$0xff]  }
 0x147   :  { %1320 = vmatprep.subr.bf16.mxu1 %v1417_v30 }
 0x148   :  { %v538_v35 = vadd.f32 %v537_v33, %v536_v31  ;;  %v550_v37 = vrot.slane %v549_v34, 4  ;;  %v1418_v31 = vld [vmem:[#allocation10 + $0x20] sm:$0xff]   ;;  %v1054_v33 = vrot.slane %v1053_v22, 1 }
 0x149   :  { %1338 = vmatprep.subr.bf16.mxu0 %v1418_v31 }
 0x14a   :  { %v539_v38 = vrot.slane %v538_v35, 2  ;;  %v551_v39 = vadd.f32 %v550_v37, %v549_v34  ;;  %v1066_v34 = vadd.f32 %v1065_v23, %v1064_v13  ;;  %v1420_v37 = vld [vmem:[#allocation10 + $0x18] sm:$0xff]   ;;  %1321 = vmatpush3.bf16.msra.mxu1 %v1417_v30  ;;  %1339 = vmatpush3.bf16.msra.mxu0 %v1418_v31 }
 0x14b   :  { %1340 = vmatprep.subr.bf16.mxu0 %v1420_v37 }
 0x14c   :  { %v540_v40 = vadd.f32 %v539_v38, %v538_v35  ;;  %v552_v41 = vrot.slane %v551_v39, 2  ;;  %v1419_v35 = vld [vmem:[#allocation11 + $0x10] sm:$0xff]   ;;  %v1055_v38 = vadd.f32 %v1054_v33, %v1053_v22 }
 0x14d   :  { %1322 = vmatprep.subr.bf16.mxu1 %v1419_v35 }
 0x14e   :  { %v541_v42 = vrot.slane %v540_v40, 1  ;;  %v553_v43 = vadd.f32 %v552_v41, %v551_v39  ;;  %v1067_v39 = vrot.slane %v1066_v34, 1  ;;  %v1422_v41 = vld [vmem:[#allocation10 + $0x10] sm:$0xff]   ;;  %1323 = vmatpush3.bf16.msra.mxu1 %v1419_v35  ;;  %1341 = vmatpush3.bf16.msra.mxu0 %v1420_v37 }
 0x14f   :  { %1342 = vmatprep.subr.bf16.mxu0 %v1422_v41 }
 0x150   :  { %v542_v44 = vadd.f32 %v541_v42, %v540_v40  ;;  %v554_v45 = vrot.slane %v553_v43, 1  ;;  %v1421_v40 = vld [vmem:[#allocation11 + $0x8] sm:$0xff]   ;;  %v1068_v42 = vadd.f32 %v1067_v39, %v1066_v34 }
 0x151   :  { %1324 = vmatprep.subr.bf16.mxu1 %v1421_v40  ;;  %v1428_v39 = vld [vmem:[#allocation13 + $0x28] sm:$0xff]  }
 0x152   :  { %556 = vrot.lane.b32.xlu0 %v542_v44, %s1614_s29  ;;  %v555_v46 = vadd.f32 %v554_v45, %v553_v43  ;;  %v1423_v43 = vld [vmem:[#allocation11] sm:$0xff]   ;;  %1325 = vmatpush3.bf16.msra.mxu1 %v1421_v40 }
 0x153   :  { %1343 = vmatpush3.bf16.msra.mxu0 %v1422_v41  ;;  %1326 = vmatprep.subr.bf16.mxu1 %v1423_v43  ;;  %v1425_v45 = vld [vmem:[#allocation10] sm:$0xff]   ;;  %v1430_v41 = vld [vmem:[#allocation13 + $0x18] sm:$0xff]  }
 0x154   :  { %v1429_v40 = vld [vmem:[#allocation13 + $0x20] sm:$0xff]  }
 0x156   :  { %559 = vrot.lane.b32.xlu0 %v555_v46, %s1614_s29  ;;  %1327 = vmatpush3.bf16.msra.mxu1 %v1423_v43  ;;  %v1433_v43 = vld [vmem:[#allocation13] sm:$0xff]  }
 0x1c4   :  { %v557_v47 = vpop.permute.xlu0 %556 }
 0x1c5   :  { %v558_v48 = vadd.f32 %v557_v47, %v542_v44  ;;  %v1424_v44 = vld [vmem:[#allocation10 + $0x8] sm:$0xff]  }
 0x1c6   :  { %1344 = vmatprep.subr.bf16.mxu0 %v1424_v44 }
 0x1c7   :  { %562 = vrot.lane.b32.xlu1 %v558_v48, %s1624_s4  ;;  %1345 = vmatpush3.bf16.msra.mxu0 %v1424_v44 }
 0x1c8   :  { %v560_v49 = vpop.permute.xlu0 %559  ;;  %1346 = vmatprep.subr.bf16.mxu0 %v1425_v45 }
 0x1c9   :  { %v561_v50 = vadd.f32 %v560_v49, %v555_v46  ;;  %v1426_v46 = vld [vmem:[#allocation13 + $0x38] sm:$0xff]  }
 0x1ca   :  { %1352 = vmatprep.subr.bf16.mxu1 %v1426_v46 }
 0x1cb   :  { %565 = vrot.lane.b32.xlu1 %v561_v50, %s1624_s4  ;;  %1347 = vmatpush3.bf16.msra.mxu0 %v1425_v45 }
 0x239   :  { %v563_v51 = vpop.permute.xlu1 %562 }
 0x23a   :  { %v564_v52 = vadd.f32 %v563_v51, %v558_v48 }
 0x23c   :  { %568 = vrot.lane.b32.xlu0 %v564_v52, %s1625_s6 }
 0x23d   :  { %v566_v53 = vpop.permute.xlu1 %565 }
 0x23e   :  { %v567_v54 = vadd.f32 %v566_v53, %v561_v50 }
 0x240   :  { %571 = vrot.lane.b32.xlu1 %v567_v54, %s1625_s6 }
 0x2ae   :  { %v569_v17 = vpop.permute.xlu0 %568 }
 0x2af   :  { %v570_v20 = vadd.f32 %v569_v17, %v564_v52 }
 0x2b1   :  { %574 = vrot.lane.b32.xlu0 %v570_v20, %s1620_s24 }
 0x2b2   :  { %v572_v28 = vpop.permute.xlu1 %571 }
 0x2b3   :  { %v573_v32 = vadd.f32 %v572_v28, %v567_v54 }
 0x2b5   :  { %577 = vrot.lane.b32.xlu1 %v573_v32, %s1620_s24 }
 0x2b9   :  { %1069 = vrot.lane.b32.xlu1 %v1055_v38, %s1614_s29 }
 0x2bd   :  { %1072 = vrot.lane.b32.xlu1 %v1068_v42, %s1614_s29 }
 0x323   :  { %v575_v47 = vpop.permute.xlu0 %574 }
 0x324   :  { %v576_v48 = vadd.f32 %v575_v47, %v570_v20 }
 0x326   :  { %v580_v49 = vmul.f32 0.001953125, %v576_v48 }
 0x327   :  { %v578_v50 = vpop.permute.xlu1 %577 }
 0x328   :  { %v579_v51 = vadd.f32 %v578_v50, %v573_v32  ;;  %v582_v52 = vmul.f32 %v580_v49, %v580_v49  ;;  %v587_v62 = vrot.slane %v580_v49, %v1823_v60 }
 0x32a   :  { %v581_v53 = vmul.f32 0.001953125, %v579_v51  ;;  %v590_v3 = vsub.f32 %v1774_v18, %v587_v62  ;;  %v591_v4 = vsub.f32 %v1780_v21, %v587_v62  ;;  %v588_v5 = vsub.f32 %v1772_v15, %v587_v62 }
 0x32b   :  { %v1070_v54 = vpop.permute.xlu1 %1069  ;;  %v589_v7 = vsub.f32 %v1776_v19, %v587_v62 }
 0x32c   :  { %v583_v55 = vsub.f32 %v581_v53, %v582_v52  ;;  %v1814_v56 = vadd.f32 %v1070_v54, %v1055_v38 }
 0x32e   :  { %v592_v57 = vadd.f32 1e-05, %v583_v55  ;;  %1075 = vrot.lane.b32.xlu1 %v1814_v56, %s1624_s4 }
 0x32f   :  { %v1073_v58 = vpop.permute.xlu1 %1072 }
 0x330   :  { %1436 = vrsqrt.f32 %v592_v57  ;;  %v1818_v59 = vadd.f32 %v1073_v58, %v1068_v42  ;;  %v1432_v42 = vld [vmem:[#allocation13 + $0x8] sm:$0xff]  }
 0x332   :  { %1078 = vrot.lane.b32.xlu1 %v1818_v59, %s1624_s4 }
 0x33d   :  { %v1437_v0 = vpop.eup %1436 }
 0x33e   :  { %v597_v8 = vrot.slane %v1437_v0, %v1823_v60 }
 0x340   :  { %v598_v9 = vmul.f32 %v597_v8, %v588_v5  ;;  %v599_v10 = vmul.f32 %v597_v8, %v589_v7  ;;  %v600_v11 = vmul.f32 %v597_v8, %v590_v3  ;;  %v601_v12 = vmul.f32 %v597_v8, %v591_v4 }
 0x342   :  { %v602_v13 = vmax.f32 %v598_v9, 0.0  ;;  %v603_v14 = vmax.f32 %v599_v10, 0.0  ;;  %v604_v16 = vmax.f32 %v600_v11, 0.0  ;;  %v605_v17 = vmax.f32 %v601_v12, 0.0 }
 0x344   :  { %v630_v18 = vpack.c.bf16 %v603_v14, %v602_v13  ;;  %v608_v20 = vrot.slane %v604_v16, 7  ;;  %v631_v21 = vpack.c.bf16 %v605_v17, %v604_v16  ;;  %v606_v15 = vrot.slane %v602_v13, 7 }
 0x345   :  { %v607_v19 = vrot.slane %v603_v14, 7  ;;  %v609_v22 = vrot.slane %v605_v17, 7  ;;  %v618_v23 = vrot.slane %v602_v13, 1  ;;  %v619_v27 = vrot.slane %v603_v14, 1 }
 0x346   :  { %1328 = vmatprep.mubr.bf16.mxu1 %v630_v18  ;;  %v620_v28 = vrot.slane %v604_v16, 1  ;;  %v621_v44 = vrot.slane %v605_v17, 1 }
 0x347   :  { %1329 = vmatmul.mubr.bf16.vlgmr.msra.gmra.mxu1 %v631_v21  ;;  %v612_v30 = vsel %vm196_vm0, %v606_v15, %v607_v19  ;;  %v613_v31 = vsel %vm196_vm0, %v609_v22, %v606_v15  ;;  %v610_v32 = vsel %vm196_vm0, %v608_v20, %v609_v22  ;;  %v611_v33 = vsel %vm196_vm0, %v607_v19, %v608_v20 }
 0x348   :  { %1353 = vmatpush3.bf16.msra.mxu1 %v1426_v46  ;;  %v1205_v34 = vpack.c.bf16 %v612_v30, %v613_v31  ;;  %v623_v35 = vsel %vm217_vm1, %v619_v27, %v620_v28  ;;  %v624_v37 = vsel %vm217_vm1, %v618_v23, %v619_v27  ;;  %v1209_v29 = vpack.c.bf16 %v610_v32, %v611_v33 }
 0x349   :  { %v1221_v38 = vpack.c.bf16 %v623_v35, %v624_v37  ;;  %1354 = vmatprep.subr.bf16.mxu1 %v1427_v25  ;;  %v622_v45 = vsel %vm217_vm1, %v620_v28, %v621_v44  ;;  %v625_v46 = vsel %vm217_vm1, %v621_v44, %v618_v23 }
 0x34a   :  { %1348 = vmatprep.mubr.msk.bf16.mxu0 %vm1838_vm11, %v1205_v34  ;;  %v1225_v47 = vpack.c.bf16 %v625_v46, %v622_v45 }
 0x34b   :  { %1368 = vmatprep.mubr.msk.bf16.mxu1 %vm1220_vm12, %v1221_v38  ;;  %1349 = vmatmul.mubr.msk.bf16.vlgmr.msra.gmra.mxu0 %vm1208_vm13, %v1209_v29 }
 0x34c   :  { %1355 = vmatpush3.bf16.msra.mxu1 %v1427_v25 }
 0x34d   :  { %1356 = vmatprep.subr.bf16.mxu1 %v1428_v39 }
 0x350   :  { %1357 = vmatpush3.bf16.msra.mxu1 %v1428_v39 }
 0x351   :  { %1358 = vmatprep.subr.bf16.mxu1 %v1429_v40 }
 0x354   :  { %1359 = vmatpush3.bf16.msra.mxu1 %v1429_v40 }
 0x355   :  { %1360 = vmatprep.subr.bf16.mxu1 %v1430_v41 }
 0x358   :  { %1361 = vmatpush3.bf16.msra.mxu1 %v1430_v41 }
 0x359   :  { %1362 = vmatprep.subr.bf16.mxu1 %v1431_v26 }
 0x35c   :  { %1363 = vmatpush3.bf16.msra.mxu1 %v1431_v26 }
 0x35d   :  { %1364 = vmatprep.subr.bf16.mxu1 %v1432_v42 }
 0x360   :  { %1365 = vmatpush3.bf16.msra.mxu1 %v1432_v42 }
 0x361   :  { %1366 = vmatprep.subr.bf16.mxu1 %v1433_v43 }
 0x364   :  { %1367 = vmatpush3.bf16.msra.mxu1 %v1433_v43 }
 0x367   :  { %1369 = vmatmul.mubr.msk.bf16.vlgmr.msra.gmra.mxu1 %vm1224_vm15, %v1225_v47 }
 0x3a0   :  { %v1076_v48 = vpop.permute.xlu1 %1075 }
 0x3a1   :  { %v1077_v49 = vadd.f32 %v1076_v48, %v1814_v56 }
 0x3a3   :  { %1081 = vrot.lane.b32.xlu1 %v1077_v49, %s1625_s6 }
 0x3a4   :  { %v1079_v50 = vpop.permute.xlu1 %1078 }
 0x3a5   :  { %v1080_v36 = vadd.f32 %v1079_v50, %v1818_v59 }
 0x3a7   :  { %1084 = vrot.lane.b32.xlu1 %v1080_v36, %s1625_s6 }
 0x407   :  { %v1330_v2 = vpop.f32.mrf.mxu1 }
 0x409   :  { %v750_v55 = vpop.f32.mrf.mxu1 }
 0x40b   :  { %v1350_v56 = vpop.f32.mrf.mxu0  ;;  %v1331_v57 = vpop.f32.mrf.mxu1 }
 0x40c   :  { %v856_v8 = vadd.f32 %v1350_v56, %v1330_v2 }
 0x40d   :  { %v847_v58 = vpop.f32.mrf.mxu0  ;;  %v753_v59 = vpop.f32.mrf.mxu1 }
 0x40e   :  { %v848_v5 = vadd.f32 %v847_v58, %v750_v55 }
 0x40f   :  { %v1351_v62 = vpop.f32.mrf.mxu0 }
 0x410   :  { %v859_v12 = vadd.f32 %v1351_v62, %v1331_v57 }
 0x411   :  { %v850_v3 = vpop.f32.mrf.mxu0 }
 0x412   :  { %v851_v9 = vadd.f32 %v850_v3, %v753_v59 }
 0x415   :  { %v1082_v51 = vpop.permute.xlu1 %1081 }
 0x416   :  { %v1875_v52 = vadd.f32 %v1082_v51, %v1077_v49 }
 0x418   :  { %1087 = vrot.lane.b32.xlu1 %v1875_v52, %s1620_s24 }
 0x419   :  { %v1085_v53 = vpop.permute.xlu1 %1084 }
 0x41a   :  { %v1879_v54 = vadd.f32 %v1085_v53, %v1080_v36 }
 0x41c   :  { %1090 = vrot.lane.b32.xlu1 %v1879_v54, %s1620_s24 }
 0x427   :  { %v1370_v0 = vpop.f32.mrf.mxu1 }
 0x428   :  { %v1885_v13 = vadd.f32 %v1370_v0, %v856_v8 }
 0x429   :  { %v960_v4 = vpop.f32.mrf.mxu1 }
 0x42a   :  { %v1883_v10 = vadd.f32 %v960_v4, %v848_v5  ;;  %v990_v21 = vmul.f32 %v1885_v13, %v1885_v13 }
 0x42b   :  { %v1371_v7 = vpop.f32.mrf.mxu1 }
 0x42c   :  { %v988_v16 = vmul.f32 %v1883_v10, %v1883_v10  ;;  %v1891_v17 = vadd.f32 %v1371_v7, %v859_v12 }
 0x42d   :  { %v963_v11 = vpop.f32.mrf.mxu1 }
 0x42e   :  { %v1887_v14 = vadd.f32 %v963_v11, %v851_v9  ;;  %v991_v22 = vmul.f32 %v1891_v17, %v1891_v17 }
 0x430   :  { %v979_v18 = vadd.f32 %v1887_v14, %v1883_v10  ;;  %v989_v20 = vmul.f32 %v1887_v14, %v1887_v14 }
 0x432   :  { %v980_v15 = vadd.f32 %v979_v18, %v1885_v13  ;;  %v992_v19 = vadd.f32 %v989_v20, %v988_v16 }
 0x434   :  { %v993_v23 = vadd.f32 %v992_v19, %v990_v21  ;;  %v981_v25 = vadd.f32 %v980_v15, %v1891_v17 }
 0x436   :  { %v982_v24 = vrot.slane %v981_v25, 4  ;;  %v994_v27 = vadd.f32 %v993_v23, %v991_v22 }
 0x438   :  { %v983_v28 = vadd.f32 %v982_v24, %v981_v25  ;;  %v995_v30 = vrot.slane %v994_v27, 4 }
 0x43a   :  { %v984_v31 = vrot.slane %v983_v28, 2  ;;  %v996_v32 = vadd.f32 %v995_v30, %v994_v27 }
 0x43c   :  { %v985_v33 = vadd.f32 %v984_v31, %v983_v28  ;;  %v997_v34 = vrot.slane %v996_v32, 2 }
 0x43e   :  { %v986_v35 = vrot.slane %v985_v33, 1  ;;  %v998_v37 = vadd.f32 %v997_v34, %v996_v32 }
 0x440   :  { %v987_v29 = vadd.f32 %v986_v35, %v985_v33  ;;  %v999_v38 = vrot.slane %v998_v37, 1 }
 0x442   :  { %1001 = vrot.lane.b32.xlu0 %v987_v29, %s1614_s29  ;;  %v1000_v39 = vadd.f32 %v999_v38, %v998_v37 }
 0x446   :  { %1004 = vrot.lane.b32.xlu0 %v1000_v39, %s1614_s29 }
 0x48a   :  { %v1088_v36 = vpop.permute.xlu1 %1087 }
 0x48b   :  { %v1089_v2 = vadd.f32 %v1088_v36, %v1875_v52 }
 0x48d   :  { %v1093_v55 = vmul.f32 0.001953125, %v1089_v2 }
 0x48e   :  { %v1091_v51 = vpop.permute.xlu1 %1090 }
 0x48f   :  { %v1092_v53 = vadd.f32 %v1091_v51, %v1879_v54  ;;  %v1095_v57 = vmul.f32 %v1093_v55, %v1093_v55  ;;  %v1100_v52 = vrot.slane %v1093_v55, %v1823_v60 }
 0x491   :  { %v1094_v56 = vmul.f32 0.001953125, %v1092_v53  ;;  %v1101_v18 = vsub.f32 %v1764_v61, %v1100_v52  ;;  %v1102_v21 = vsub.f32 %v1766_v63, %v1100_v52  ;;  %v1103_v15 = vsub.f32 %v1768_v1, %v1100_v52 }
 0x492   :  { %v1104_v19 = vsub.f32 %v1770_v6, %v1100_v52 }
 0x493   :  { %v1096_v59 = vsub.f32 %v1094_v56, %v1095_v57 }
 0x495   :  { %v1105_v4 = vadd.f32 1e-05, %v1096_v59 }
 0x497   :  { %1438 = vrsqrt.f32 %v1105_v4 }
 0x4a4   :  { %v1439_v12 = vpop.eup %1438 }
 0x4a5   :  { %v1110_v16 = vrot.slane %v1439_v12, %v1823_v60 }
 0x4a7   :  { %v1111_v28 = vmul.f32 %v1110_v16, %v1101_v18  ;;  %v1112_v30 = vmul.f32 %v1110_v16, %v1102_v21  ;;  %v1113_v61 = vmul.f32 %v1110_v16, %v1103_v15  ;;  %v1114_v31 = vmul.f32 %v1110_v16, %v1104_v19 }
 0x4b4   :  { %v1002_v40 = vpop.permute.xlu0 %1001 }
 0x4b5   :  { %v1003_v41 = vadd.f32 %v1002_v40, %v987_v29 }
 0x4b7   :  { %1007 = vrot.lane.b32.xlu0 %v1003_v41, %s1624_s4 }
 0x4b8   :  { %v1005_v26 = vpop.permute.xlu0 %1004 }
 0x4b9   :  { %v1006_v42 = vadd.f32 %v1005_v26, %v1000_v39 }
 0x4bb   :  { %1010 = vrot.lane.b32.xlu0 %v1006_v42, %s1624_s4 }
 0x529   :  { %v1008_v43 = vpop.permute.xlu0 %1007 }
 0x52a   :  { %v1009_v44 = vadd.f32 %v1008_v43, %v1003_v41 }
 0x52c   :  { %1013 = vrot.lane.b32.xlu0 %v1009_v44, %s1625_s6 }
 0x52d   :  { %v1011_v45 = vpop.permute.xlu0 %1010 }
 0x52e   :  { %v1012_v46 = vadd.f32 %v1011_v45, %v1006_v42 }
 0x530   :  { %1016 = vrot.lane.b32.xlu0 %v1012_v46, %s1625_s6 }
 0x59e   :  { %v1014_v47 = vpop.permute.xlu0 %1013 }
 0x59f   :  { %v1015_v48 = vadd.f32 %v1014_v47, %v1009_v44 }
 0x5a1   :  { %1019 = vrot.lane.b32.xlu0 %v1015_v48, %s1620_s24 }
 0x5a2   :  { %v1017_v49 = vpop.permute.xlu0 %1016 }
 0x5a3   :  { %v1018_v50 = vadd.f32 %v1017_v49, %v1012_v46 }
 0x5a5   :  { %1022 = vrot.lane.b32.xlu0 %v1018_v50, %s1620_s24 }
 0x613   :  { %v1020_v58 = vpop.permute.xlu0 %1019 }
 0x614   :  { %v1021_v62 = vadd.f32 %v1020_v58, %v1015_v48 }
 0x616   :  { %v1025_v0 = vmul.f32 0.001953125, %v1021_v62 }
 0x617   :  { %v1023_v3 = vpop.permute.xlu0 %1022 }
 0x618   :  { %v1024_v5 = vadd.f32 %v1023_v3, %v1018_v50  ;;  %v1027_v7 = vmul.f32 %v1025_v0, %v1025_v0  ;;  %v1032_v54 = vrot.slane %v1025_v0, %v1823_v60 }
 0x61a   :  { %v1026_v8 = vmul.f32 0.001953125, %v1024_v5  ;;  %v1033_v22 = vsub.f32 %v1883_v10, %v1032_v54  ;;  %v1034_v23 = vsub.f32 %v1887_v14, %v1032_v54  ;;  %v1035_v25 = vsub.f32 %v1885_v13, %v1032_v54 }
 0x61b   :  { %v1036_v24 = vsub.f32 %v1891_v17, %v1032_v54 }
 0x61c   :  { %v1028_v9 = vsub.f32 %v1026_v8, %v1027_v7 }
 0x61e   :  { %v1037_v11 = vadd.f32 1e-05, %v1028_v9 }
 0x620   :  { %1440 = vrsqrt.f32 %v1037_v11 }
 0x62d   :  { %v1441_v20 = vpop.eup %1440 }
 0x62e   :  { %v1042_v27 = vrot.slane %v1441_v20, %v1823_v60 }
 0x630   :  { %v1043_v32 = vmul.f32 %v1042_v27, %v1033_v22  ;;  %v1044_v63 = vmul.f32 %v1042_v27, %v1034_v23  ;;  %v1045_v33 = vmul.f32 %v1042_v27, %v1035_v25  ;;  %v1046_v1 = vmul.f32 %v1042_v27, %v1036_v24 }
 0x632   :  { %v1115_v34 = vadd.f32 %v1111_v28, %v1043_v32  ;;  %v1116_v6 = vadd.f32 %v1112_v30, %v1044_v63  ;;  %v1117_v35 = vadd.f32 %v1113_v61, %v1045_v33  ;;  %v1118_v10 = vadd.f32 %v1114_v31, %v1046_v1 }
 0x634   :  { %v1119_v14 = vmax.f32 %v1115_v34, 0.0  ;;  %v1120_v13 = vmax.f32 %v1116_v6, 0.0  ;;  %v1121_v37 = vmax.f32 %v1117_v35, 0.0  ;;  %v1122_v17 = vmax.f32 %v1118_v10, 0.0 }
 0x636   :  { %v1238_v29 = vpack.c.bf16 %v1120_v13, %v1119_v14  ;;  %v1243_v60 = vpack.c.bf16 %v1122_v17, %v1121_v37 }
 0x638   :  { %1239 = vst [vmem:[#allocation14] sm:$0xff] %v1238_v29   ;;  %1245 = vst [vmem:[#allocation14 + $0x8] sm:$0xff] %v1243_v60  }
 0x639   :  { %1593 = shalt.err (!%p1590_p11)
}
 0x63a   :  { %1154 = dma.vmem_to_hbm [thread:$0]  %s1149_s15, 256, %s1938_s7, [#allocation4], %s1614_s29, %s1614_s29, %s1615_s30  }
 0x63b   :  { %1610 = dma.done.wait [#allocation4], 256  }
 0x63c   :  { %1611 = vsyncadd [#allocation4], 4294967040 }
 0x63d   :  { %1158 = vsyncpa [#allocation3], 1 }
 0x63e   :  { %1159 = vsyncpa [#allocation6], 1 }
 0x63f   :  { %1160 = vsyncpa [#allocation9], 1 }
 0x640   :  { %1161 = vsyncpa [#allocation12], 1 }
 0x641   :  { %1162 = vsyncpa [#allocation4], 1 }

</bundles_post_ra>
